<compile_context>
chip_gen: v5e
topology: v5e:2x2
jax: 0.10.0
libtpu: 0.0.40
codegen_flags: <defaults>
</compile_context>

<pallas_src>
import functools

import jax
import jax.numpy as jnp
from jax.experimental import pallas as pl
from jax.experimental.pallas import tpu as pltpu

ROT = 4        # `rot` in the PyTorch module
BN_EPS = 1e-5  # nn.BatchNorm2d default eps


def _round_up(x, m):
    return (x + m - 1) // m * m


# ----------------------------- weight construction (plain-JAX glue) ---------------

def _rot90_weight(w):
    # torch: wr = wr[:, :, ::-1, :]; wr = wr.permute(0, 1, 3, 2)
    # => w2[o, c, i, j] = w[o, c, k-1-j, i]
    return jnp.swapaxes(w[:, :, ::-1, :], 2, 3)


def _rotate_channel(w, r=ROT):
    # torch rotateChannel: split dim=1 into r groups, reorder to [g_{r-1}, g_0, ..., g_{r-2}]
    o, ci, kh, kw = w.shape
    g = w.reshape(o, r, ci // r, kh, kw)
    g = jnp.roll(g, shift=1, axis=1)
    return g.reshape(o, ci, kh, kw)


def _rotated_weights_oihw(conv_w, seperate=False):
    """Replicates Rotate_Conv.cal_weight (r == 4); returns list of 4 OIHW weights."""
    ws = []
    wr = conv_w
    for i in range(ROT):
        if (not seperate) and i != 0:
            wr = _rotate_channel(wr)
        wr = _rot90_weight(wr)
        ws.append(wr)
    return ws


def build_rotated_weight_matrix(conv_w, seperate=False):
    """Fused weight matrix (ROT*Co4, Ci*ks*ks).

    K is ordered (ci, ki, kj) to match jax.lax.conv_general_dilated_patches
    (channel-major, filter-tap-minor). Rotation r occupies rows [r*Co4,(r+1)*Co4),
    i.e. output rows are already in torch.cat([y_0..y_3], dim=1) order.
    """
    co4, ci, ks, _ = conv_w.shape
    ws = _rotated_weights_oihw(conv_w, seperate=seperate)
    flat = [w.reshape(co4, ci * ks * ks) for w in ws]   # OIHW flatten == (ci, ki, kj)
    return jnp.concatenate(flat, axis=0)


# ----------------------------------- Pallas kernels --------------------------------

def _conv_stats_kernel(w_ref, p_ref, stats_ref):
    # w_ref:     (Cout, K)          fused rotated weights (bf16), same block every tile
    # p_ref:     (K, T)             lane-dense im2col patch tile (bf16)
    # stats_ref: (1, 2*Cout, 128)   per-tile [sum; sum-of-squares], lane-broadcast (f32)
    y = jnp.dot(w_ref[...], p_ref[...], preferred_element_type=jnp.float32)   # (Cout, T)
    s = jnp.sum(y, axis=1, keepdims=True)          # (Cout, 1)
    ss = jnp.sum(y * y, axis=1, keepdims=True)     # (Cout, 1) — single pass over y
    stats = jnp.concatenate([s, ss], axis=0)       # (2*Cout, 1)
    stats_ref[0] = jnp.broadcast_to(stats, stats_ref.shape[1:])


def _conv_bn_kernel(w_ref, p_ref, ab_ref, o_ref, *, cout):
    # ab_ref: (2*Cout, 1) f32 — rows [0:Cout] = scale (rsqrt(var+eps)), [Cout:] = shift (-mu*scale)
    y = jnp.dot(w_ref[...], p_ref[...], preferred_element_type=jnp.float32)   # (Cout, T)
    a = ab_ref[0:cout, :]
    b = ab_ref[cout:2 * cout, :]
    o_ref[...] = (y * a + b).astype(o_ref.dtype)


# ------------------------------------- wrapper -------------------------------------

def rotate_conv_forward(x_nchw, conv_w, *, ks, seperate=False, ifbn=True, stride=1,
                        tile_nhw=None, compute_dtype=jnp.bfloat16):
    """x_nchw: (N, Ci, H, W); conv_w: (Co4, Ci, ks, ks). Returns (N, ROT*Co4, Ho, Wo) f32."""
    n, ci, hh, ww = x_nchw.shape
    co4 = conv_w.shape[0]
    cout = ROT * co4
    k_dim = ci * ks * ks
    pad = (ks - 1) // 2
    ho = (hh + 2 * pad - ks) // stride + 1
    wo = (ww + 2 * pad - ks) // stride + 1
    nhw = n * ho * wo

    # Lane-tile over N*Ho*Wo: multiple of 128 (256 preferred on v6e/v7x), capped so the
    # per-tile VMEM footprint (~72*T + 32*T bytes, double-buffered) stays far below the
    # v7x 64 MiB / v5e 16 MiB-default budgets.
    if tile_nhw is None:
        tile_nhw = min(4096, _round_up(nhw, 256))
    assert tile_nhw % 128 == 0, "tile_nhw must be a multiple of 128 lanes"
    nhw_pad = _round_up(nhw, tile_nhw)
    n_tiles = nhw_pad // tile_nhw

    # Fused rotated-weight matrix (tiny), cast to the MXU input dtype.
    w2d = build_rotated_weight_matrix(conv_w, seperate=seperate).astype(compute_dtype)

    # Lane-dense im2col built ONCE by XLA; zero padding is folded into the patch
    # extraction (no separate HBM pad round-trip of x). Feature ordering: c*ks*ks+ki*ks+kj.
    patches = jax.lax.conv_general_dilated_patches(
        x_nchw.astype(compute_dtype), filter_shape=(ks, ks),
        window_strides=(stride, stride), padding=[(pad, pad), (pad, pad)],
        dimension_numbers=('NCHW', 'OIHW', 'NCHW'))          # (N, K, Ho, Wo)
    patches = jnp.moveaxis(patches, 1, 0).reshape(k_dim, nhw)  # (K, N*Ho*Wo)
    if nhw_pad != nhw:
        # Zero columns give y == 0 exactly -> they do not perturb the BN sums, and the
        # normalized values in those columns are sliced off below.
        patches = jnp.pad(patches, ((0, 0), (0, nhw_pad - nhw)))

    grid = (n_tiles,)
    w_spec = pl.BlockSpec((cout, k_dim), lambda t: (0, 0))
    p_spec = pl.BlockSpec((k_dim, tile_nhw), lambda t: (0, t))
    cparams = pltpu.CompilerParams(
        dimension_semantics=("parallel",),          # dual-TC sharding on v7x
        vmem_limit_bytes=32 * 1024 * 1024)

    matmul_flops = 2 * cout * k_dim * nhw_pad
    patches_bytes = int(patches.size) * patches.dtype.itemsize
    w_bytes = int(w2d.size) * w2d.dtype.itemsize

    if ifbn:
        # Pass 1: per-tile partial sums / sums-of-squares (tiny output, no conv writeback).
        stats = pl.pallas_call(
            _conv_stats_kernel,
            grid=grid,
            in_specs=[w_spec, p_spec],
            out_specs=pl.BlockSpec((1, 2 * cout, 128), lambda t: (t, 0, 0)),
            out_shape=jax.ShapeDtypeStruct((n_tiles, 2 * cout, 128), jnp.float32),
            compiler_params=cparams,
            cost_estimate=pl.CostEstimate(
                flops=matmul_flops, transcendentals=0,
                bytes_accessed=patches_bytes + w_bytes + n_tiles * 2 * cout * 128 * 4),
        )(w2d, patches)
        # Finalize (tiny): biased batch mean/var over the TRUE N*Ho*Wo count, f32.
        tot = jnp.sum(stats[:, :, 0], axis=0)                       # (2*Cout,)
        mu = tot[:cout] / nhw
        var = jnp.maximum(tot[cout:] / nhw - mu * mu, 0.0)          # E[y^2]-mu^2, f32
        scale = jax.lax.rsqrt(var + BN_EPS)
        shift = -mu * scale
    else:
        scale = jnp.ones((cout,), jnp.float32)
        shift = jnp.zeros((cout,), jnp.float32)
    ab = jnp.concatenate([scale, shift]).reshape(2 * cout, 1).astype(jnp.float32)

    # Pass 2: recompute the cheap matmul per tile and apply the per-channel affine.
    out2d = pl.pallas_call(
        functools.partial(_conv_bn_kernel, cout=cout),
        grid=grid,
        in_specs=[w_spec, p_spec, pl.BlockSpec((2 * cout, 1), lambda t: (0, 0))],
        out_specs=pl.BlockSpec((cout, tile_nhw), lambda t: (0, t)),
        out_shape=jax.ShapeDtypeStruct((cout, nhw_pad), jnp.float32),
        compiler_params=cparams,
        cost_estimate=pl.CostEstimate(
            flops=matmul_flops + 2 * cout * nhw_pad, transcendentals=0,
            bytes_accessed=patches_bytes + w_bytes + cout * nhw_pad * 4),
    )(w2d, patches, ab)

    # (Cout, N*Ho*Wo) is already channel-major (torch.cat order); only a cheap outer
    # N<->C swap remains (last two dims untouched).
    out2d = out2d[:, :nhw]
    return jnp.transpose(out2d.reshape(cout, n, ho, wo), (1, 0, 2, 3))


# ------------------------------ pure-JAX reference ---------------------------------

def reference_forward(x_nchw, conv_w, *, ks, seperate=False, ifbn=True,
                      compute_dtype=jnp.float32):
    pad = (ks - 1) // 2
    x = x_nchw.astype(compute_dtype)
    ws = [w.astype(compute_dtype) for w in _rotated_weights_oihw(conv_w, seperate=seperate)]
    ys = []
    for i in range(ROT):
        y = jax.lax.conv_general_dilated(
            x, ws[i], window_strides=(1, 1),
            padding=[(pad, pad), (pad, pad)],
            dimension_numbers=('NCHW', 'OIHW', 'NCHW'),
            preferred_element_type=jnp.float32)
        ys.append(y)
    out = jnp.concatenate(ys, axis=1)
    if ifbn:
        mu = jnp.mean(out, axis=(0, 2, 3), keepdims=True)
        var = jnp.mean((out - mu) ** 2, axis=(0, 2, 3), keepdims=True)
        out = (out - mu) * jax.lax.rsqrt(var + BN_EPS)
    return out


if __name__ == "__main__":
    key = jax.random.PRNGKey(0)
    kx, kw = jax.random.split(key)

    # Small shapes consistent with the module: in_channel=4, out_channel=8, ks=3
    N, Ci, H, W = 2, 4, 16, 16
    out_channel, ks = 8, 3
    co4 = out_channel // ROT

    x = jax.random.normal(kx, (N, Ci, H, W), dtype=jnp.float32)
    conv_w = jax.random.normal(kw, (co4, Ci, ks, ks), dtype=jnp.float32) * 0.1

    # Default (auto) tile: N*Ho*Wo = 512 -> single 512-lane tile, grid of 1.
    out = rotate_conv_forward(x, conv_w, ks=ks, seperate=False, ifbn=True, stride=1)
    out = jax.block_until_ready(out)
    assert out.shape == (N, out_channel, H, W), out.shape

    # Multi-tile path (tile=256 -> grid of 2): exercises the two-pass BN across tiles.
    out_mt = rotate_conv_forward(x, conv_w, ks=ks, seperate=False, ifbn=True, stride=1,
                                 tile_nhw=256)
    out_mt = jax.block_until_ready(out_mt)

    # Tight check against a reference using the same bf16-cast inputs (f32 accumulate).
    ref_bf16 = reference_forward(x, conv_w, ks=ks, seperate=False, ifbn=True,
                                 compute_dtype=jnp.bfloat16)
    err = float(jnp.max(jnp.abs(out - ref_bf16)))
    assert jnp.allclose(out, ref_bf16, atol=1e-2, rtol=1e-2), err
    err_mt = float(jnp.max(jnp.abs(out_mt - ref_bf16)))
    assert jnp.allclose(out_mt, ref_bf16, atol=1e-2, rtol=1e-2), err_mt

    # Sanity check against the full-fp32 (PyTorch-semantics) reference; the only
    # deviation is bf16 rounding of the conv inputs.
    ref_f32 = reference_forward(x, conv_w, ks=ks, seperate=False, ifbn=True,
                                compute_dtype=jnp.float32)
    err32 = float(jnp.max(jnp.abs(out - ref_f32)))
    assert jnp.allclose(out, ref_f32, atol=5e-2), err32

    print("KERNEL_OK")
</pallas_src>

<mosaic_0001>
module attributes {stable_mosaic.version = 11 : i64} {
  func.func @_conv_stats_kernel(%arg0: i32, %arg1: memref<8x36xbf16, #tpu.memory_space<vmem>>, %arg2: memref<36x512xbf16, #tpu.memory_space<vmem>>, %arg3: memref<1x16x128xf32, #tpu.memory_space<vmem>>) attributes {dimension_semantics = [#tpu.dimension_semantics<parallel>], iteration_bounds = array<i64: 1>, scalar_prefetch = 0 : i64, scratch_operands = 0 : i64, tpu.core_type = #tpu.core_type<tc>, window_params = [{pipeline_mode = #tpu.pipeline_mode<synchronous>, transform_indices = @transform_0, window_bounds = array<i64: 8, 36>}, {transform_indices = @transform_1, window_bounds = array<i64: 36, 512>}, {transform_indices = @transform_2, window_bounds = array<i64: 1, 16, 128>}]} {
    %c0 = arith.constant 0 : index
    %c0_0 = arith.constant 0 : index
    %0 = vector.load %arg1[%c0, %c0_0] : memref<8x36xbf16, #tpu.memory_space<vmem>>, vector<8x36xbf16>
    %c0_1 = arith.constant 0 : index
    %c0_2 = arith.constant 0 : index
    %1 = vector.load %arg2[%c0_1, %c0_2] : memref<36x512xbf16, #tpu.memory_space<vmem>>, vector<36x512xbf16>
    %cst = arith.constant dense<0.000000e+00> : vector<8x512xf32>
    %2 = tpu.matmul %0, %1, %cst {dimension_numbers = #tpu.dot_dimension_numbers<[1], [0], [0], [1], [0, 0, 1, 1], [], []>} : vector<8x36xbf16>, vector<36x512xbf16>, vector<8x512xf32> -> vector<8x512xf32>
    %cst_3 = arith.constant dense<0.000000e+00> : vector<8xf32>
    %3 = vector.multi_reduction <add>, %2, %cst_3 [1] : vector<8x512xf32> to vector<8xf32>
    %4 = vector.shape_cast %3 : vector<8xf32> to vector<8x1xf32>
    %5 = arith.mulf %2, %2 : vector<8x512xf32>
    %cst_4 = arith.constant dense<0.000000e+00> : vector<8xf32>
    %6 = vector.multi_reduction <add>, %5, %cst_4 [1] : vector<8x512xf32> to vector<8xf32>
    %7 = vector.shape_cast %6 : vector<8xf32> to vector<8x1xf32>
    %8 = tpu.concatenate %4, %7 in 0 : vector<8x1xf32>, vector<8x1xf32> -> vector<16x1xf32>
    %9 = vector.shape_cast %8 : vector<16x1xf32> to vector<16x1xf32>
    %10 = vector.broadcast %9 : vector<16x1xf32> to vector<16x128xf32>
    %c0_5 = arith.constant 0 : index
    %c0_6 = arith.constant 0 : index
    %c0_7 = arith.constant 0 : index
    %11 = vector.load %arg3[%c0_5, %c0_6, %c0_7] : memref<1x16x128xf32, #tpu.memory_space<vmem>>, vector<1x16x128xf32>
    %12 = vector.shape_cast %11 : vector<1x16x128xf32> to vector<16x128xf32>
    %13 = vector.shape_cast %10 : vector<16x128xf32> to vector<1x16x128xf32>
    tpu.vector_store %arg3[%c0_5, %c0_6, %c0_7], %13 {strides = array<i32>} : memref<1x16x128xf32, #tpu.memory_space<vmem>>, vector<1x16x128xf32>,
    return
  }
  func.func @transform_0(%arg0: i32) -> (i32, i32) {
    %c0_i32 = arith.constant 0 : i32
    %c0_i32_0 = arith.constant 0 : i32
    %c0_i32_1 = arith.constant 0 : i32
    return %c0_i32, %c0_i32_0 : i32, i32
  }
  func.func @transform_1(%arg0: i32) -> (i32, i32) {
    %c0_i32 = arith.constant 0 : i32
    %c0_i32_0 = arith.constant 0 : i32
    return %c0_i32, %arg0 : i32, i32
  }
  func.func @transform_2(%arg0: i32) -> (i32, i32, i32) {
    %c0_i32 = arith.constant 0 : i32
    %c0_i32_0 = arith.constant 0 : i32
    %c0_i32_1 = arith.constant 0 : i32
    return %arg0, %c0_i32, %c0_i32_0 : i32, i32, i32
  }
}

</mosaic_0001>

<bundles_post_ra>
// kernel: tpu_custom_call.1
= control target key start
LH: loop header
LB: loop body
LE: loop exit
PB: predicated region body
PF: predicated region fallthrough
CT: control target
= control target key end

     0   :  { %7 = vsyncpa [#allocation3], 0  ;;  %s387_s0 = inlined_call_operand.hbm [shape: bf16[8,36], index: 0, kind: input, shape index: {}]   ;;  %s388_s1 = inlined_call_operand.hbm [shape: bf16[36,512], index: 1, kind: input, shape index: {}]   ;;  %s389_s2 = inlined_call_operand.hbm [shape: f32[1,16,128], index: 2, kind: output, shape index: {}]  }
   0x1   :  { %8 = vsyncpa [#allocation6], 0 }
   0x2   :  { %9 = vsyncpa [#allocation4], 0  ;;  %s15_s11 = sshll.u32 %s387_s0, 4  ;;  %s351_s12 = smov [#allocation2]   ;;  %s16_s11 = int_to_ptr.hbm [resolvable:$true] %s15_s11 }
   0x3   :  { %s17_s13 = sshll.u32 %s351_s12, 4  ;;  %s25_s16 = sshll.u32 %s388_s1, 4  ;;  %s18_s13 = int_to_ptr.vmem [resolvable:$true] %s17_s13  ;;  %s26_s16 = int_to_ptr.hbm [resolvable:$true] %s25_s16 }
   0x4   :  { %20 = dma.hbm_to_vmem [thread:$0]  %s16_s11, 64, %s18_s13, [#allocation3]  }
   0x5   :  { %s352_s17 = smov [#allocation5]   ;;  %s353_s19 = smov 256  }
   0x6   :  { %s27_s18 = sshll.u32 %s352_s17, 4  ;;  %s354_s20 = smov 16   ;;  %s28_s18 = int_to_ptr.vmem [resolvable:$true] %s27_s18 }
   0x7   :  { %33 = dma.hbm_to_vmem [thread:$0]  %s26_s16, 1280, %s28_s18, [#allocation6], %s353_s19, %s353_s19, %s354_s20  }
   0x8   :  { %345 = dma.done.wait [#allocation3], 64  }
   0x9   :  { %346 = vsyncadd [#allocation3], 4294967232 }
   0xa   :  { %347 = dma.done.wait [#allocation6], 1280  }
   0xb   :  { %348 = vsyncadd [#allocation6], 4294966016  ;;  %v52_v0 = vld [vmem:[#allocation5 + $0x40] sm:$0x33]  ;;  %v53_v1 = vld [vmem:[#allocation5 + $0x48] sm:$0x33] }
   0xc   :  { %v80_v2 = vunpack.c.l.b16 %v52_v0  ;;  %v81_v3 = vunpack.c.h.b16 %v52_v0  ;;  %v82_v4 = vunpack.c.l.b16 %v53_v1  ;;  %v83_v5 = vunpack.c.h.b16 %v53_v1  ;;  %v237_v6 = vld [vmem:[#allocation5 + $0x20] sm:$0xf]  ;;  %v261_v7 = vld [vmem:[#allocation5 + $0x2c] sm:$0xf0]  ;;  %v259_v12 = vld [vmem:[#allocation5 + $0x24] sm:$0xf] }
   0xd   :  { %vm108_vm0 = vcmask 1041408   ;;  %v239_v13 = vld [vmem:[#allocation5 + $0x30] sm:$0xf0]  ;;  %v245_v14 = vld [vmem:[#allocation5 + $0x28] sm:$0xf]  ;;  %v238_v22 = vor.u32 %v261_v7, %v237_v6  ;;  %vm104_vm1 = vcmask 293888  }
   0xe   :  { %v92_v8 = vpack.c.b16 %v80_v2, %v80_v2  ;;  %v93_v9 = vpack.c.b16 %v81_v3, %v81_v3  ;;  %v94_v10 = vpack.c.b16 %v82_v4, %v82_v4  ;;  %v95_v11 = vpack.c.b16 %v83_v5, %v83_v5  ;;  %v262_v15 = vld [vmem:[#allocation5 + $0x34] sm:$0xf0]  ;;  %v260_v16 = vld [vmem:[#allocation5 + $0x2c] sm:$0xf]  ;;  %v247_v17 = vld [vmem:[#allocation5 + $0x38] sm:$0xf0] }
   0xf   :  { %v242_v23 = vor.u32 %v259_v12, %v239_v13  ;;  %v221_v24 = vld [vmem:[#allocation5] sm:$0xf]  ;;  %v257_v25 = vld [vmem:[#allocation5 + $0xc] sm:$0xf0]  ;;  %v246_v26 = vor.u32 %v262_v15, %v245_v14  ;;  %v250_v27 = vor.u32 %v260_v16, %v247_v17  ;;  %v255_v28 = vld [vmem:[#allocation5 + $0x4] sm:$0xf] }
  0x10   :  { %v110_v18 = vsel %vm108_vm0, %v92_v8, 0  ;;  %v113_v19 = vsel %vm108_vm0, %v93_v9, 0  ;;  %v116_v20 = vsel %vm108_vm0, %v94_v10, 0  ;;  %v119_v21 = vsel %vm108_vm0, %v95_v11, 0  ;;  %v223_v29 = vld [vmem:[#allocation5 + $0x10] sm:$0xf0] }
  0x11   :  { %126 = vmatpush.bf16.msra.mxu0 %v110_v18  ;;  %139 = vmatpush.bf16.msra.mxu1 %v113_v19  ;;  %v229_v30 = vld [vmem:[#allocation5 + $0x8] sm:$0xf]  ;;  %v258_v31 = vld [vmem:[#allocation5 + $0x14] sm:$0xf0]  ;;  %v256_v32 = vld [vmem:[#allocation5 + $0xc] sm:$0xf]  ;;  %v222_v34 = vor.u32 %v257_v25, %v221_v24  ;;  %v226_v35 = vor.u32 %v255_v28, %v223_v29 }
  0x12   :  { %152 = vmatpush.bf16.msra.mxu2 %v116_v20  ;;  %165 = vmatpush.bf16.msra.mxu3 %v119_v21  ;;  %v231_v33 = vld [vmem:[#allocation5 + $0x18] sm:$0xf0]  ;;  %v230_v36 = vor.u32 %v258_v31, %v229_v30  ;;  %v355_v39 = vmov 0   ;;  %s356_s0 = smov [#allocation7]   ;;  %s205_s23 = sshll.u32 %s389_s2, 4  ;;  %s206_s23 = int_to_ptr.hbm [resolvable:$true] %s205_s23 }
  0x13   :  { %v234_v37 = vor.u32 %v256_v32, %v231_v33  ;;  %v43_v38 = vld [vmem:[#allocation2] sm:$0xf]  ;;  %271 = vset.pattern.permute.xlu1 %v355_v39  ;;  %272 = vset.pattern.permute.xlu0 %v355_v39  ;;  %s203_s1 = sshll.u32 %s356_s0, 4  ;;  %s357_s24 = smov 128   ;;  %s204_s1 = int_to_ptr.vmem [resolvable:$true] %s203_s1 }
  0x14   :  { %s358_s25 = smov 8  }
  0x15   :  { %127 = vmatpush.bf16.msra.mxu0 %v238_v22  ;;  %140 = vmatpush.bf16.msra.mxu1 %v242_v23 }
  0x16   :  { %153 = vmatpush.bf16.msra.mxu2 %v246_v26  ;;  %166 = vmatpush.bf16.msra.mxu3 %v250_v27 }
  0x19   :  { %128 = vmatpush.bf16.msra.mxu0 %v222_v34  ;;  %141 = vmatpush.bf16.msra.mxu1 %v226_v35 }
  0x1a   :  { %154 = vmatpush.bf16.msra.mxu2 %v230_v36  ;;  %167 = vmatpush.bf16.msra.mxu3 %v234_v37 }
  0x1c   :  { %251 = vmatmul.msk.bf16.vlgmr.msra.gmra.mxu0 %vm104_vm1, %v43_v38  ;;  %252 = vmatmul.msk.bf16.vlgmr.msra.gmra.mxu1 %vm104_vm1, %v43_v38 }
  0x1d   :  { %253 = vmatmul.msk.bf16.vlgmr.msra.gmra.mxu2 %vm104_vm1, %v43_v38  ;;  %254 = vmatmul.msk.bf16.vlgmr.msra.gmra.mxu3 %vm104_vm1, %v43_v38 }
  0x99   :  { %v130_v40 = vpop.f32.mrf.mxu0  ;;  %v143_v41 = vpop.f32.mrf.mxu1 }
  0x9a   :  { %v173_v42 = vadd.f32 %v143_v41, %v130_v40  ;;  %v178_v43 = vmul.f32 %v130_v40, %v130_v40  ;;  %v179_v44 = vmul.f32 %v143_v41, %v143_v41 }
  0x9c   :  { %v182_v50 = vadd.f32 %v179_v44, %v178_v43 }
  0xa0   :  { %v156_v45 = vpop.f32.mrf.mxu2  ;;  %v169_v46 = vpop.f32.mrf.mxu3 }
  0xa1   :  { %v174_v47 = vadd.f32 %v173_v42, %v156_v45  ;;  %v132_v48 = vpop.f32.mrf.mxu0  ;;  %v145_v49 = vpop.f32.mrf.mxu1  ;;  %v180_v51 = vmul.f32 %v156_v45, %v156_v45  ;;  %v181_v53 = vmul.f32 %v169_v46, %v169_v46 }
  0xa3   :  { %v175_v52 = vadd.f32 %v174_v47, %v169_v46  ;;  %v183_v54 = vadd.f32 %v182_v50, %v180_v51 }
  0xa5   :  { %176 = vadd.xlane.f32.xlu0 %v175_v52  ;;  %v184_v57 = vadd.f32 %v183_v54, %v181_v53 }
  0xa8   :  { %v158_v55 = vpop.f32.mrf.mxu2  ;;  %v171_v56 = vpop.f32.mrf.mxu3 }
  0xad   :  { %185 = vadd.xlane.f32.xlu0 %v184_v57 }
 0x118   :  { %v177_v58 = vpop.xlane.xlu0 %176 }
 0x119   :  { %189 = vperm.xlu1 %271, %v177_v58  }
 0x120   :  { %v186_v59 = vpop.xlane.xlu0 %185 }
 0x121   :  { %194 = vperm.xlu1 %271, %v186_v59  }
 0x18b   :  { %v190_v60 = vpop.permute.xlu1 %189 }
 0x18c   :  { %197 = vst [vmem:[#allocation7] sm:$0xff] %v190_v60 }
 0x193   :  { %v195_v61 = vpop.permute.xlu1 %194 }
 0x194   :  { %198 = vst [vmem:[#allocation7 + $0x8] sm:$0xff] %v195_v61 }
 0x195   :  { %211 = dma.vmem_to_hbm [thread:$0]  %s204_s1, 256, %s206_s23, [#allocation4], %s357_s24, %s357_s24, %s358_s25  }
 0x196   :  { %349 = dma.done.wait [#allocation4], 256  }
 0x197   :  { %350 = vsyncadd [#allocation4], 4294967040 }
 0x198   :  { %216 = vsyncpa [#allocation3], 1 }
 0x199   :  { %217 = vsyncpa [#allocation6], 1 }
 0x19a   :  { %218 = vsyncpa [#allocation4], 1 }

</bundles_post_ra>
